<compile_context>
chip_gen: v7x
topology: tpu7x:2x2x1
jax: 0.10.0
libtpu: 0.0.40
codegen_flags: <defaults>
</compile_context>

<pallas_src>
import jax
import jax.numpy as jnp
from jax import lax
from jax.experimental import pallas as pl
from jax.experimental.pallas import tpu as pltpu

HIDDEN = 128
LANES = 128


def _round_up(n, m):
    return ((n + m - 1) // m) * m


def _chemical_rnn_seq_kernel(x_ref, hx0_ref, w_ih_ref, w_hh_ref, w_out_ref,
                             acts_ref):
    """Fused T-step recurrence, everything resident in VMEM.

    x_ref     : (T, din_p)   zero-padded input sequence (batch = 1 per step)
    hx0_ref   : (1, 128)     initial hidden state
    w_ih_ref  : (128, din_p) PyTorch layout (out, in), zero-padded in-dim
    w_hh_ref  : (128, 128)
    w_out_ref : (128, 128)   rows >= dim_out are zero padding
    acts_ref  : (T, 512)     per-step [ih | hh | hx_new | out_padded]
    """
    T = x_ref.shape[0]
    # x @ W.T on the MXU: contract the last dim of both operands (no .T).
    dn = (((1,), (1,)), ((), ()))

    def step(t, hx):
        xt = x_ref[pl.ds(t, 1), :]                                 # (1, din_p)
        ih = lax.dot_general(xt, w_ih_ref[...], dn,
                             preferred_element_type=jnp.float32)   # (1, 128)
        hh = lax.dot_general(hx, w_hh_ref[...], dn,
                             preferred_element_type=jnp.float32)   # (1, 128)
        hx_new = jnp.tanh(ih + hh)
        out = lax.dot_general(hx_new, w_out_ref[...], dn,
                              preferred_element_type=jnp.float32)  # (1, 128)
        # Single lane-dense (1, 512) store per step.
        acts_ref[pl.ds(t, 1), :] = jnp.concatenate(
            [ih, hh, hx_new, out], axis=1)
        return hx_new

    lax.fori_loop(0, T, step, hx0_ref[...])


@jax.jit
def chemical_rnn_sequence(x_seq, hx0, w_ih, w_hh, w_out):
    """Runs T recurrent steps in one pallas_call.

    Returns (ih, hh, hx_all, out) with shapes (T,128),(T,128),(T,128),(T,dim_out).
    """
    T, dim_in = x_seq.shape
    dim_out = w_out.shape[0]
    assert dim_out <= HIDDEN, "packed output slab supports dim_out <= 128"

    # Zero-pad the contracting dim of x / W_ih to full lane width and the
    # output rows of W_out to 128, so every kernel load/store is lane-dense.
    # Zeros do not change any dot product.
    din_p = max(LANES, _round_up(dim_in, LANES))
    if din_p != dim_in:
        x_seq = jnp.pad(x_seq, ((0, 0), (0, din_p - dim_in)))
        w_ih = jnp.pad(w_ih, ((0, 0), (0, din_p - dim_in)))
    w_out_p = jnp.pad(w_out, ((0, HIDDEN - dim_out), (0, 0)))

    vmem = pl.BlockSpec(memory_space=pltpu.MemorySpace.VMEM)
    acts = pl.pallas_call(
        _chemical_rnn_seq_kernel,
        out_shape=jax.ShapeDtypeStruct((T, 4 * HIDDEN), jnp.float32),
        in_specs=[vmem] * 5,
        out_specs=vmem,
    )(x_seq, hx0, w_ih, w_hh, w_out_p)

    ih = acts[:, 0 * HIDDEN:1 * HIDDEN]
    hh = acts[:, 1 * HIDDEN:2 * HIDDEN]
    hx_all = acts[:, 2 * HIDDEN:3 * HIDDEN]
    out = acts[:, 3 * HIDDEN:3 * HIDDEN + dim_out]
    return ih, hh, hx_all, out


class ChemicalRnnPallas:
    """JAX/Pallas port of ChemicalRnn (forward pass only)."""

    def __init__(self, key, number_of_slow_chemicals=1, dim_in=1, dim_out=1):
        self.dim_in = dim_in
        self.dim_out = dim_out
        self.numberOfSlowChemicals = number_of_slow_chemicals

        k1, k2, k3 = jax.random.split(key, 3)
        # PyTorch Linear weight shapes: (out_features, in_features).
        self.RNN_forward1_ih = (jax.random.normal(k1, (HIDDEN, dim_in), jnp.float32)
                                * (1.0 / jnp.sqrt(dim_in)))
        self.RNN_forward1_hh = (jax.random.normal(k2, (HIDDEN, HIDDEN), jnp.float32)
                                * (1.0 / jnp.sqrt(HIDDEN)))
        self.forward1 = (jax.random.normal(k3, (dim_out, HIDDEN), jnp.float32)
                         * (1.0 / jnp.sqrt(HIDDEN)))

        # Hidden state, batch = 1 (as in the PyTorch module).
        self.hx1 = jnp.zeros((1, HIDDEN), jnp.float32)

        # Chemical / feedback parameters: allocated but unused in forward().
        self.slow_RNN1_ih = jnp.zeros((number_of_slow_chemicals, HIDDEN, dim_in), jnp.float32)
        self.slow_RNN1_hh = jnp.zeros((number_of_slow_chemicals, HIDDEN, HIDDEN), jnp.float32)
        self.slow_chemical1 = jnp.zeros((number_of_slow_chemicals, dim_out, HIDDEN), jnp.float32)
        self.RNN1_ih_feedback = jnp.zeros((dim_out, dim_in), jnp.float32)
        self.RNN1_hh_feedback = jnp.zeros((dim_out, HIDDEN), jnp.float32)
        self.feedback1 = jnp.zeros((dim_out, HIDDEN), jnp.float32)

    def reset_hidden(self, batch_size):
        assert batch_size == 1, "kernel supports batch=1 (matches hx1 = zeros(1, 128))"
        self.hx1 = jnp.zeros((batch_size, HIDDEN), jnp.float32)

    def forward(self, x):
        """Single-step forward, API-compatible with the PyTorch module."""
        assert x.shape[1] == self.dim_in, 'Input shape is not correct.'
        assert x.shape[0] == self.hx1.shape[0], 'Batch size is not correct.'
        hx1_prev = self.hx1
        ih, hh, hx_all, out = chemical_rnn_sequence(
            x, self.hx1, self.RNN_forward1_ih, self.RNN_forward1_hh, self.forward1)
        self.hx1 = hx_all
        activations = {
            'RNN_forward1_ih.weight': (x, ih),
            'RNN_forward1_hh.weight': (hx1_prev, hh),
            'forward1.weight': (self.hx1, out),
        }
        return activations, out

    def forward_sequence(self, x_seq):
        """Fused multi-step forward: x_seq is (T, dim_in), one batch-1 step per row."""
        assert x_seq.shape[1] == self.dim_in, 'Input shape is not correct.'
        hx1_prev = self.hx1
        ih, hh, hx_all, out = chemical_rnn_sequence(
            x_seq, self.hx1, self.RNN_forward1_ih, self.RNN_forward1_hh, self.forward1)
        self.hx1 = hx_all[-1:]
        T = x_seq.shape[0]
        hx_prev_all = jnp.concatenate([hx1_prev, hx_all[:-1]], axis=0)
        activations = [
            {'RNN_forward1_ih.weight': (x_seq[t:t + 1], ih[t:t + 1]),
             'RNN_forward1_hh.weight': (hx_prev_all[t:t + 1], hh[t:t + 1]),
             'forward1.weight': (hx_all[t:t + 1], out[t:t + 1])}
            for t in range(T)
        ]
        return activations, out


if __name__ == "__main__":
    key = jax.random.PRNGKey(0)
    k_param, k_x = jax.random.split(key)

    dim_in, dim_out, T = 32, 16, 8
    model = ChemicalRnnPallas(k_param, number_of_slow_chemicals=1,
                              dim_in=dim_in, dim_out=dim_out)

    # Sequence of T timesteps, batch = 1 per step (matches hx1 = zeros(1, 128)).
    x_seq = jax.random.normal(k_x, (T, dim_in), jnp.float32)

    # Fused run: T recurrent steps in a single pallas_call.
    acts, outs = model.forward_sequence(x_seq)
    outs = jax.block_until_ready(outs)

    # Pure-JAX reference recurrence.
    hx_ref = jnp.zeros((1, HIDDEN), jnp.float32)
    outs_ref = []
    for t in range(T):
        ih_r = x_seq[t:t + 1] @ model.RNN_forward1_ih.T
        hh_r = hx_ref @ model.RNN_forward1_hh.T
        hx_ref = jnp.tanh(ih_r + hh_r)
        outs_ref.append(hx_ref @ model.forward1.T)
    outs_ref = jnp.concatenate(outs_ref, axis=0)

    assert outs.shape == (T, dim_out)
    assert jnp.allclose(outs, outs_ref, atol=1e-5, rtol=1e-5), "sequence output mismatch"
    assert jnp.allclose(model.hx1, hx_ref, atol=1e-5, rtol=1e-5), "hidden state mismatch"

    # Also exercise the single-step API (x of shape (1, dim_in)).
    model.reset_hidden(1)
    for t in range(2):
        acts_t, out_t = model.forward(x_seq[t:t + 1])
    out_t = jax.block_until_ready(out_t)
    assert jnp.allclose(out_t, outs_ref[1:2], atol=1e-5, rtol=1e-5), "single-step mismatch"

    print("KERNEL_OK")
</pallas_src>

<mosaic_0001>
module attributes {stable_mosaic.version = 11 : i64} {
  func.func @_chemical_rnn_seq_kernel(%arg0: memref<8x128xf32, #tpu.memory_space<vmem>>, %arg1: memref<1x128xf32, #tpu.memory_space<vmem>>, %arg2: memref<128x128xf32, #tpu.memory_space<vmem>>, %arg3: memref<128x128xf32, #tpu.memory_space<vmem>>, %arg4: memref<128x128xf32, #tpu.memory_space<vmem>>, %arg5: memref<8x512xf32, #tpu.memory_space<vmem>>) attributes {dimension_semantics = [], scalar_prefetch = 0 : i64, scratch_operands = 0 : i64, tpu.core_type = #tpu.core_type<tc>} {
    %c0 = arith.constant 0 : index
    %c0_0 = arith.constant 0 : index
    %0 = vector.load %arg1[%c0, %c0_0] : memref<1x128xf32, #tpu.memory_space<vmem>>, vector<1x128xf32>
    %c0_i32 = arith.constant 0 : i32
    %c8_i32 = arith.constant 8 : i32
    %1 = arith.addi %c0_i32, %c8_i32 : i32
    %c1_i32 = arith.constant 1 : i32
    %2 = scf.for %arg6 = %c0_i32 to %1 step %c1_i32 iter_args(%arg7 = %0) -> (vector<1x128xf32>)  : i32 {
      %3 = arith.index_cast %arg6 : i32 to index
      %c0_2 = arith.constant 0 : index
      %4 = vector.load %arg0[%3, %c0_2] : memref<8x128xf32, #tpu.memory_space<vmem>>, vector<1x128xf32>
      %c0_3 = arith.constant 0 : index
      %c0_4 = arith.constant 0 : index
      %5 = vector.load %arg2[%c0_3, %c0_4] : memref<128x128xf32, #tpu.memory_space<vmem>>, vector<128x128xf32>
      %cst = arith.constant dense<0.000000e+00> : vector<1x128xf32>
      %6 = tpu.matmul %4, %5, %cst {dimension_numbers = #tpu.dot_dimension_numbers<[1], [1], [0], [0], [0, 0, 1, 0], [], []>} : vector<1x128xf32>, vector<128x128xf32>, vector<1x128xf32> -> vector<1x128xf32>
      %c0_5 = arith.constant 0 : index
      %c0_6 = arith.constant 0 : index
      %7 = vector.load %arg3[%c0_5, %c0_6] : memref<128x128xf32, #tpu.memory_space<vmem>>, vector<128x128xf32>
      %cst_7 = arith.constant dense<0.000000e+00> : vector<1x128xf32>
      %8 = tpu.matmul %arg7, %7, %cst_7 {dimension_numbers = #tpu.dot_dimension_numbers<[1], [1], [0], [0], [0, 0, 1, 0], [], []>} : vector<1x128xf32>, vector<128x128xf32>, vector<1x128xf32> -> vector<1x128xf32>
      %9 = arith.addf %6, %8 : vector<1x128xf32>
      %10 = math.tanh %9 : vector<1x128xf32>
      %c0_8 = arith.constant 0 : index
      %c0_9 = arith.constant 0 : index
      %11 = vector.load %arg4[%c0_8, %c0_9] : memref<128x128xf32, #tpu.memory_space<vmem>>, vector<128x128xf32>
      %cst_10 = arith.constant dense<0.000000e+00> : vector<1x128xf32>
      %12 = tpu.matmul %10, %11, %cst_10 {dimension_numbers = #tpu.dot_dimension_numbers<[1], [1], [0], [0], [0, 0, 1, 0], [], []>} : vector<1x128xf32>, vector<128x128xf32>, vector<1x128xf32> -> vector<1x128xf32>
      %13 = tpu.concatenate %6, %8, %10, %12 in 1 : vector<1x128xf32>, vector<1x128xf32>, vector<1x128xf32>, vector<1x128xf32> -> vector<1x512xf32>
      %14 = arith.index_cast %arg6 : i32 to index
      %c0_11 = arith.constant 0 : index
      %15 = vector.load %arg5[%14, %c0_11] : memref<8x512xf32, #tpu.memory_space<vmem>>, vector<1x512xf32>
      tpu.vector_store %arg5[%14, %c0_11], %13 {strides = array<i32>} : memref<8x512xf32, #tpu.memory_space<vmem>>, vector<1x512xf32>,
      scf.yield %10 : vector<1x128xf32>
    }
    %c8_i32_1 = arith.constant 8 : i32
    return
  }
}

</mosaic_0001>

<bundles_post_ra>
// kernel: chemical_rnn_sequence.1
= control target key start
LH: loop header
LB: loop body
LE: loop exit
PB: predicated region body
PF: predicated region fallthrough
CT: control target
= control target key end

     0   :  { %s657_s20 = smov 0   ;;  %s854_s0 = inlined_call_operand.vmem [shape: f32[8,128], index: 0, kind: input, shape index: {}]   ;;  %s855_s1 = inlined_call_operand.vmem [shape: f32[1,128], index: 1, kind: input, shape index: {}]   ;;  %s856_s2 = inlined_call_operand.vmem [shape: f32[128,128], index: 2, kind: input, shape index: {}]   ;;  %s857_s3 = inlined_call_operand.vmem [shape: f32[128,128], index: 3, kind: input, shape index: {}]   ;;  %s858_s4 = inlined_call_operand.vmem [shape: f32[128,128], index: 4, kind: input, shape index: {}]   ;;  %s859_s5 = inlined_call_operand.vmem [shape: f32[8,512], index: 5, kind: output, shape index: {}]  }
   0x1   :  { %v20_v0 = vld [vmem:[%s855_s1] sm:$0x1]  }
   0x2 LB: > { %v30_v1 = vld [vmem:[%s856_s2] sm:$0xff]  ;;  %v31_v2 = vld [vmem:[%s856_s2 + $0x8] sm:$0xff]  ;;  %v618_v4 = vmov 0.0|0.0   ;;  %vm619_vm0 = vmmov 0   ;;  %v620_v8 = vmov 0.0   ;;  %v32_v9 = vld [vmem:[%s856_s2 + $0x10] sm:$0xff]  ;;  %s28_s11 = scalar_lea.vmem %s854_s0, %s616_s20  ;;  %s616_s20 = sphi %s657_s20, %s26_s20   ;;  %v612_v0 = vphi %v20_v0, %v601_v0  }
   0x3   : > { %v116_v3 = vld [vmem:[%s857_s3] sm:$0xff]  ;;  %508 = vmatprep.subr.bf16.mxu0 %v618_v4  ;;  %532 = vmatprep.subr.bf16.mxu1 %v618_v4  ;;  %v509_v5 = vpack.c.bf16 %v31_v2, %v30_v1  ;;  %v117_v6 = vld [vmem:[%s857_s3 + $0x8] sm:$0xff]  ;;  %v33_v10 = vld [vmem:[%s856_s2 + $0x18] sm:$0xff]  ;;  %s323_s19 = sshra.s32 %s616_s20, 3  ;;  %s326_s21 = sand.u32 7, %s616_s20 }
   0x4   : > { %v533_v7 = vpack.c.bf16 %v117_v6, %v116_v3  ;;  %435 = vmatprep.mubr.msk.f32.mxu0 %vm619_vm0, %v620_v8  ;;  %470 = vmatprep.mubr.msk.f32.mxu1 %vm619_vm0, %v620_v8  ;;  %v118_v11 = vld [vmem:[%s857_s3 + $0x10] sm:$0xff]  ;;  %v119_v12 = vld [vmem:[%s857_s3 + $0x18] sm:$0xff]  ;;  %v512_v13 = vpack.c.bf16 %v33_v10, %v32_v9  ;;  %v34_v15 = vld [vmem:[%s856_s2 + $0x20] sm:$0xff]  ;;  %s351_s22 = sshll.u32 %s323_s19, 5  ;;  %s26_s20 = sadd.s32 1, %s616_s20  }
   0x5   : > { %510 = vmatpush3.bf16.xpose.msra.mxu0 %v509_v5  ;;  %v536_v14 = vpack.c.bf16 %v119_v12, %v118_v11  ;;  %v35_v16 = vld [vmem:[%s856_s2 + $0x28] sm:$0xff]  ;;  %v120_v17 = vld [vmem:[%s857_s3 + $0x20] sm:$0xff]  ;;  %v36_v21 = vld [vmem:[%s856_s2 + $0x30] sm:$0xff]  ;;  %s329_s23 = sadd.s32 %s351_s22, %s326_s21  ;;  %p23_p0 = scmp.ge.s32.totalorder %s26_s20, 8  }
   0x6   : > { %534 = vmatpush3.bf16.xpose.msra.mxu1 %v533_v7  ;;  %511 = vmatprep.subr.bf16.mxu0 %v618_v4  ;;  %v121_v18 = vld [vmem:[%s857_s3 + $0x28] sm:$0xff]  ;;  %v515_v19 = vpack.c.bf16 %v35_v16, %v34_v15  ;;  %v37_v22 = vld [vmem:[%s856_s2 + $0x38] sm:$0xff]  ;;  %v122_v23 = vld [vmem:[%s857_s3 + $0x30] sm:$0xff]  ;;  %s330_s25 = scalar_lea.vmem %s859_s5, %s329_s23 }
   0x7   : > { %535 = vmatprep.subr.bf16.mxu1 %v618_v4  ;;  %v539_v20 = vpack.c.bf16 %v121_v18, %v120_v17  ;;  %v123_v24 = vld [vmem:[%s857_s3 + $0x38] sm:$0xff]  ;;  %v518_v25 = vpack.c.bf16 %v37_v22, %v36_v21  ;;  %v38_v27 = vld [vmem:[%s856_s2 + $0x40] sm:$0xff]  ;;  %v39_v28 = vld [vmem:[%s856_s2 + $0x48] sm:$0xff] }
   0x8   : > { %v542_v26 = vpack.c.bf16 %v123_v24, %v122_v23  ;;  %v124_v29 = vld [vmem:[%s857_s3 + $0x40] sm:$0xff]  ;;  %v125_v30 = vld [vmem:[%s857_s3 + $0x48] sm:$0xff]  ;;  %v521_v31 = vpack.c.bf16 %v39_v28, %v38_v27  ;;  %v40_v33 = vld [vmem:[%s856_s2 + $0x50] sm:$0xff] }
   0x9   : > { %v545_v32 = vpack.c.bf16 %v125_v30, %v124_v29  ;;  %v41_v34 = vld [vmem:[%s856_s2 + $0x58] sm:$0xff]  ;;  %v126_v35 = vld [vmem:[%s857_s3 + $0x50] sm:$0xff]  ;;  %v42_v39 = vld [vmem:[%s856_s2 + $0x60] sm:$0xff] }
   0xa   : > { %v127_v36 = vld [vmem:[%s857_s3 + $0x58] sm:$0xff]  ;;  %v524_v37 = vpack.c.bf16 %v41_v34, %v40_v33  ;;  %v43_v40 = vld [vmem:[%s856_s2 + $0x68] sm:$0xff]  ;;  %v128_v41 = vld [vmem:[%s857_s3 + $0x60] sm:$0xff] }
   0xb   : > { %v548_v38 = vpack.c.bf16 %v127_v36, %v126_v35  ;;  %v129_v42 = vld [vmem:[%s857_s3 + $0x68] sm:$0xff]  ;;  %v527_v43 = vpack.c.bf16 %v43_v40, %v42_v39  ;;  %v44_v45 = vld [vmem:[%s856_s2 + $0x70] sm:$0xff]  ;;  %v45_v46 = vld [vmem:[%s856_s2 + $0x78] sm:$0xff] }
   0xc   : > { %v551_v44 = vpack.c.bf16 %v129_v42, %v128_v41  ;;  %v130_v47 = vld [vmem:[%s857_s3 + $0x70] sm:$0xff]  ;;  %v131_v48 = vld [vmem:[%s857_s3 + $0x78] sm:$0xff]  ;;  %v530_v49 = vpack.c.bf16 %v45_v46, %v44_v45  ;;  %v204_v51 = vld [vmem:[%s858_s4] sm:$0xff] }
   0xd   : > { %513 = vmatpush3.bf16.xpose.msra.mxu0 %v512_v13  ;;  %v554_v50 = vpack.c.bf16 %v131_v48, %v130_v47  ;;  %v205_v52 = vld [vmem:[%s858_s4 + $0x8] sm:$0xff]  ;;  %v29_v53 = vld [vmem:[%s28_s11] sm:$0x1]  ;;  %v206_v55 = vld [vmem:[%s858_s4 + $0x10] sm:$0xff] }
   0xe   : > { %537 = vmatpush3.bf16.xpose.msra.mxu1 %v536_v14  ;;  %514 = vmatprep.subr.bf16.mxu0 %v618_v4  ;;  %v557_v54 = vpack.c.bf16 %v205_v52, %v204_v51  ;;  %v207_v56 = vld [vmem:[%s858_s4 + $0x18] sm:$0xff]  ;;  %v208_v58 = vld [vmem:[%s858_s4 + $0x20] sm:$0xff]  ;;  %v209_v59 = vld [vmem:[%s858_s4 + $0x28] sm:$0xff] }
   0xf   : > { %538 = vmatprep.subr.bf16.mxu1 %v618_v4  ;;  %v560_v57 = vpack.c.bf16 %v207_v56, %v206_v55  ;;  %v563_v60 = vpack.c.bf16 %v209_v59, %v208_v58  ;;  %v210_v61 = vld [vmem:[%s858_s4 + $0x30] sm:$0xff]  ;;  %v211_v62 = vld [vmem:[%s858_s4 + $0x38] sm:$0xff]  ;;  %v213_v1 = vld [vmem:[%s858_s4 + $0x48] sm:$0xff] }
  0x10   : > { %v566_v63 = vpack.c.bf16 %v211_v62, %v210_v61  ;;  %v214_v3 = vld [vmem:[%s858_s4 + $0x50] sm:$0xff]  ;;  %v215_v5 = vld [vmem:[%s858_s4 + $0x58] sm:$0xff]  ;;  %v216_v7 = vld [vmem:[%s858_s4 + $0x60] sm:$0xff] }
  0x11   : > { %v572_v6 = vpack.c.bf16 %v215_v5, %v214_v3  ;;  %v218_v10 = vld [vmem:[%s858_s4 + $0x70] sm:$0xff]  ;;  %v219_v11 = vld [vmem:[%s858_s4 + $0x78] sm:$0xff] }
  0x12   : > { %v578_v12 = vpack.c.bf16 %v219_v11, %v218_v10 }
  0x15   : > { %516 = vmatpush3.bf16.xpose.msra.mxu0 %v515_v19 }
  0x16   : > { %540 = vmatpush3.bf16.xpose.msra.mxu1 %v539_v20  ;;  %517 = vmatprep.subr.bf16.mxu0 %v618_v4  ;;  %v299_v20 = vlaneseq }
  0x17   : > { %541 = vmatprep.subr.bf16.mxu1 %v618_v4 }
  0x18   : > { %v300_v22 = vshrl.u32 %v299_v20, 7  ;;  %vm321_vm1 = vcmp.lt.s32.totalorder %v299_v20, 512 }
  0x1d   : > { %519 = vmatpush3.bf16.xpose.msra.mxu0 %v518_v25 }
  0x1e   : > { %543 = vmatpush3.bf16.xpose.msra.mxu1 %v542_v26  ;;  %520 = vmatprep.subr.bf16.mxu0 %v618_v4 }
  0x1f   : > { %544 = vmatprep.subr.bf16.mxu1 %v618_v4 }
  0x25   : > { %522 = vmatpush3.bf16.xpose.msra.mxu0 %v521_v31 }
  0x26   : > { %546 = vmatpush3.bf16.xpose.msra.mxu1 %v545_v32  ;;  %523 = vmatprep.subr.bf16.mxu0 %v618_v4 }
  0x27   : > { %547 = vmatprep.subr.bf16.mxu1 %v618_v4 }
  0x2d   : > { %525 = vmatpush3.bf16.xpose.msra.mxu0 %v524_v37 }
  0x2e   : > { %549 = vmatpush3.bf16.xpose.msra.mxu1 %v548_v38  ;;  %526 = vmatprep.subr.bf16.mxu0 %v618_v4 }
  0x2f   : > { %550 = vmatprep.subr.bf16.mxu1 %v618_v4 }
  0x35   : > { %528 = vmatpush3.bf16.xpose.msra.mxu0 %v527_v43 }
  0x36   : > { %552 = vmatpush3.bf16.xpose.msra.mxu1 %v551_v44  ;;  %529 = vmatprep.subr.bf16.mxu0 %v618_v4 }
  0x37   : > { %553 = vmatprep.subr.bf16.mxu1 %v618_v4 }
  0x3d   : > { %531 = vmatpush3.bf16.xpose.msra.mxu0 %v530_v49 }
  0x3e   : > { %555 = vmatpush3.bf16.xpose.msra.mxu1 %v554_v50  ;;  %556 = vmatprep.subr.bf16.mxu0 %v618_v4 }
  0x44   : > { %436 = vmatmul.mubr.f32.vlgmr.msra.gmra.mrb[0].mxu0 %v29_v53 }
  0x45   : > { %471 = vmatmul.mubr.f32.vlgmr.msra.gmra.mrb[0].mxu1 %v612_v0  ;;  %558 = vmatpush3.bf16.xpose.msra.mxu0 %v557_v54  ;;  %v212_v0 = vld [vmem:[%s858_s4 + $0x40] sm:$0xff] }
  0x46   : > { %559 = vmatprep.subr.bf16.mxu0 %v618_v4  ;;  %505 = vmatprep.mubr.msk.f32.mxu0 %vm619_vm0, %v620_v8  ;;  %v569_v2 = vpack.c.bf16 %v213_v1, %v212_v0  ;;  %v217_v8 = vld [vmem:[%s858_s4 + $0x68] sm:$0xff] }
  0x47   : > { %v575_v9 = vpack.c.bf16 %v217_v8, %v216_v7 }
  0x4d   : > { %561 = vmatpush3.bf16.xpose.msra.mxu0 %v560_v57 }
  0x4e   : > { %562 = vmatprep.subr.bf16.mxu0 %v618_v4 }
  0x55   : > { %564 = vmatpush3.bf16.xpose.msra.mxu0 %v563_v60 }
  0x56   : > { %565 = vmatprep.subr.bf16.mxu0 %v618_v4 }
  0x5d   : > { %567 = vmatpush3.bf16.xpose.msra.mxu0 %v566_v63 }
  0x5e   : > { %568 = vmatprep.subr.bf16.mxu0 %v618_v4 }
  0x65   : > { %570 = vmatpush3.bf16.xpose.msra.mxu0 %v569_v2 }
  0x66   : > { %571 = vmatprep.subr.bf16.mxu0 %v618_v4 }
  0x6d   : > { %573 = vmatpush3.bf16.xpose.msra.mxu0 %v572_v6 }
  0x6e   : > { %574 = vmatprep.subr.bf16.mxu0 %v618_v4 }
  0x75   : > { %576 = vmatpush3.bf16.xpose.msra.mxu0 %v575_v9 }
  0x76   : > { %577 = vmatprep.subr.bf16.mxu0 %v618_v4  ;;  %v621_v4 = vmov 1966171168  }
  0x77   : > { %v297_v19 = vunpack.c.l.s4 %v621_v4 }
  0x79   : > { %v298_v21 = vunpack.c.0.s8 %v297_v19 }
  0x7b   : > { %v301_v23 = vsub.s32 %v298_v21, %v300_v22 }
  0x7d   : > { %579 = vmatpush3.bf16.xpose.msra.mxu0 %v578_v12 }
 0x117   : > { %v112_v13 = vpop.f32.mrb[0].mxu0 }
 0x118   : > { %v198_v14 = vpop.f32.mrb[0].mxu1  ;;  %v437_v15 = vpop.f32.mrb[1].mxu0 }
 0x119   : > { %v202_v16 = vadd.f32 %v198_v14, %v112_v13  ;;  %v294_v17 = vcombine.low %v112_v13, %v198_v14  ;;  %v472_v18 = vpop.f32.mrb[1].mxu1 }
 0x11b   : > { %600 = vtanh.f32 %v202_v16  ;;  %v302_v27 = vrot.slane %v294_v17, %v301_v23 }
 0x125   : > { %v601_v0 = vpop.eup %600  }
 0x126   : > { %506 = vmatmul.mubr.f32.vlgmr.msra.gmra.mrb[2].mxu0 %v601_v0 }
 0x1f9   : > { %v286_v24 = vpop.f32.mrb[2].mxu0 }
 0x1fa   : > { %v295_v25 = vcombine.low %v601_v0, %v286_v24  ;;  %v507_v26 = vpop.f32.mrb[3].mxu0 }
 0x1fc   : > { %v309_v28 = vrot.slane %v295_v25, %v301_v23  ;;  %25 = sbr.rel (!%p23_p0) target bundleno = 2 (0x2), region = 49 }
 0x1fe   : > { %v310_v29 = vcombine.low %v302_v27, %v309_v28 }
 0x200   : > { %v317_v30 = vrot.slane %v310_v29, %v301_v23 }
 0x202   : > { %331 = vst.msk [vmem:[%s330_s25] ss:$8 sm:$0xf] %vm321_vm1, %v317_v30 }

</bundles_post_ra>
